<compile_context>
chip_gen: v7x
topology: tpu7x:2x2x1
jax: 0.10.0
libtpu: 0.0.40
codegen_flags: <defaults>
</compile_context>

<pallas_src>
import functools
import numpy as np

import jax
import jax.numpy as jnp
from jax import lax
from jax.experimental import pallas as pl
from jax.experimental.pallas import tpu as pltpu


# ----------------------------------------------------------------------------
# Pallas kernel: one batch element per grid step, everything lives in VMEM.
# ----------------------------------------------------------------------------
def decoder_kernel(x_ref, g1_ref, g2_ref,
                   wq_ref, wk_ref, wv_ref, wo_ref,
                   wg_ref, wu_ref, wd_ref,
                   cos_ref, sin_ref,
                   o_ref,
                   *, T, C, C_pad, head_dim, kv_heads, repeat, eps, scale):
    f32 = jnp.float32
    bf16 = jnp.bfloat16
    KH = kv_heads
    group = repeat * head_dim
    half = group // 2

    x = x_ref[0]                                                  # (T, C) f32

    # ---- input RMSNorm (mean of squares over the *sequence* dim, per ref) ----
    rms = jnp.sqrt(jnp.mean(x * x, axis=0, keepdims=True))        # (1, C)
    xn = x * pl.reciprocal(rms + eps, approx=True) * g1_ref[...]  # (T, C) f32
    xn_b = xn.astype(bf16)

    # ---- grouped-query attention, all kv-heads batched ----
    # Head-major weights (KH, C, *) -> one batched dot_general per projection.
    xb = jnp.broadcast_to(xn_b[None], (KH, T, C))                 # (KH, T, C)
    q3 = jnp.einsum('htc,hcg->htg', xb, wq_ref[...],
                    preferred_element_type=f32)                   # (KH, T, G)
    k3 = jnp.einsum('htc,hcd->htd', xb, wk_ref[...],
                    preferred_element_type=f32)                   # (KH, T, hd)
    v3 = jnp.einsum('htc,hcd->htd', xb, wv_ref[...],
                    preferred_element_type=f32)                   # (KH, T, hd)

    # torch `repeat(1, 1, 3)` channel tiling -> lane concat (no MXU work).
    k3 = jnp.concatenate([k3] * repeat, axis=-1)                  # (KH, T, G)
    v3 = jnp.concatenate([v3] * repeat, axis=-1)                  # (KH, T, G)

    # RoPE: rotate-half as a lane shuffle + negate (XLU/VPU), not a matmul.
    cos = cos_ref[...]                                            # (T, G)
    sin = sin_ref[...]

    def rope(t):                                                  # t: (KH, T, G)
        rot = jnp.concatenate([-t[..., half:], t[..., :half]], axis=-1)
        return t * cos + rot * sin

    q3 = rope(q3)
    k3 = rope(k3)

    # Causal SDPA for all heads in one batched contraction.
    s = jnp.einsum('hqd,hkd->hqk', q3.astype(bf16), k3.astype(bf16),
                   preferred_element_type=f32) * scale            # (KH, T, T)
    row = lax.broadcasted_iota(jnp.int32, (1, T, T), 1)
    col = lax.broadcasted_iota(jnp.int32, (1, T, T), 2)
    s = jnp.where(col <= row, s, -1e30)
    m = jnp.max(s, axis=-1, keepdims=True)
    p = jnp.exp(s - m)
    p = p * pl.reciprocal(jnp.sum(p, axis=-1, keepdims=True), approx=True)
    o3 = jnp.einsum('hqk,hkd->hqd', p.astype(bf16), v3.astype(bf16),
                    preferred_element_type=f32)                   # (KH, T, G)

    # Output projection with the head-concat folded in: sum_h o3[h] @ wo[h].
    attn = jnp.einsum('htg,hgc->htc', o3.astype(bf16), wo_ref[...],
                      preferred_element_type=f32)                 # (KH, T, C)
    attn = jnp.sum(attn, axis=0)                                  # (T, C)

    h = xn + attn                                                 # residual 1

    # ---- output RMSNorm ----
    rms2 = jnp.sqrt(jnp.mean(h * h, axis=0, keepdims=True))
    hn = h * pl.reciprocal(rms2 + eps, approx=True) * g2_ref[...]
    hn_b = hn.astype(bf16)

    # ---- MLP: down( SiLU(up * gate) ) ----
    gate = jnp.dot(hn_b, wg_ref[...], preferred_element_type=f32)
    up = jnp.dot(hn_b, wu_ref[...], preferred_element_type=f32)
    z = up * gate
    act = z * jax.nn.sigmoid(z)
    down = jnp.dot(act.astype(bf16), wd_ref[...], preferred_element_type=f32)

    y = hn + down                                                 # (T, C) f32

    # Lane-dense (unmasked) store: pad C up to a multiple of 128.
    if C_pad > C:
        y = jnp.concatenate([y, jnp.zeros((T, C_pad - C), f32)], axis=-1)
    o_ref[0] = y


# ----------------------------------------------------------------------------
# Wrapper
# ----------------------------------------------------------------------------
def decoder_forward(x, params, *, head_dim, kv_heads, n_heads, eps=1e-5):
    B, T, C = x.shape
    assert n_heads == 3 * kv_heads, "reference hard-codes k.repeat(1, 1, 3)"
    assert C == n_heads * head_dim, "attention output must fill the (B,T,C) buffer"
    repeat = n_heads // kv_heads
    group = repeat * head_dim
    scale = 1.0 / float(np.sqrt(group))
    g1, g2, wq, wk, wv, wo, wg, wu, wd, cosf, sinf = params
    hidden = wg.shape[1]

    bf16 = jnp.bfloat16
    # Head-major bf16 weight layouts so the kernel never transposes activations.
    wq3 = wq.reshape(C, kv_heads, group).transpose(1, 0, 2).astype(bf16)      # (KH,C,G)
    wk3 = wk.reshape(C, kv_heads, head_dim).transpose(1, 0, 2).astype(bf16)   # (KH,C,hd)
    wv3 = wv.reshape(C, kv_heads, head_dim).transpose(1, 0, 2).astype(bf16)   # (KH,C,hd)
    wo3 = wo.reshape(kv_heads, group, C).astype(bf16)                         # (KH,G,C)
    wg_b = wg.astype(bf16)
    wu_b = wu.astype(bf16)
    wd_b = wd.astype(bf16)

    C_pad = ((C + 127) // 128) * 128

    kernel = functools.partial(
        decoder_kernel, T=T, C=C, C_pad=C_pad, head_dim=head_dim,
        kv_heads=kv_heads, repeat=repeat, eps=eps, scale=scale)

    def whole(a):
        n = a.ndim
        return pl.BlockSpec(a.shape, lambda b, n=n: (0,) * n)

    other_ins = (g1, g2, wq3, wk3, wv3, wo3, wg_b, wu_b, wd_b, cosf, sinf)
    in_specs = [pl.BlockSpec((1, T, C), lambda b: (b, 0, 0))] + [
        whole(a) for a in other_ins]
    out_specs = pl.BlockSpec((1, T, C_pad), lambda b: (b, 0, 0))

    # Advisory cost estimate so XLA schedules this custom call sensibly.
    flops = B * (2 * T * C * (n_heads * head_dim + 2 * kv_heads * head_dim)
                 + 4 * kv_heads * T * T * group
                 + 2 * kv_heads * T * group * C
                 + 6 * T * C * hidden)
    transcendentals = B * (kv_heads * T * T + T * hidden)
    bytes_accessed = int(4 * x.size + 4 * B * T * C_pad
                         + sum(a.size * a.dtype.itemsize for a in other_ins))

    out = pl.pallas_call(
        kernel,
        out_shape=jax.ShapeDtypeStruct((B, T, C_pad), jnp.float32),
        grid_spec=pltpu.PrefetchScalarGridSpec(
            num_scalar_prefetch=0,
            grid=(B,),
            in_specs=in_specs,
            out_specs=out_specs),
        compiler_params=pltpu.CompilerParams(
            dimension_semantics=("parallel",)),
        cost_estimate=pl.CostEstimate(
            flops=int(flops), transcendentals=int(transcendentals),
            bytes_accessed=bytes_accessed),
    )(x, g1, g2, wq3, wk3, wv3, wo3, wg_b, wu_b, wd_b, cosf, sinf)

    return out[..., :C]   # drop lane padding (cheap XLA slice)


# ----------------------------------------------------------------------------
# Pure-JAX reference (for a correctness sanity check)
# ----------------------------------------------------------------------------
def _rope_ref(t, cosf, sinf):
    half = t.shape[-1] // 2
    t1, t2 = t[..., :half], t[..., half:]
    return t * cosf + jnp.concatenate([-t2, t1], axis=-1) * sinf


def decoder_ref(x, params, *, head_dim, kv_heads, n_heads, eps=1e-5):
    g1, g2, wq, wk, wv, wo, wg, wu, wd, cosf, sinf = params
    repeat = n_heads // kv_heads
    group = repeat * head_dim
    scale = 1.0 / float(np.sqrt(group))
    B, T, C = x.shape

    rms = jnp.sqrt(jnp.mean(x * x, axis=1, keepdims=True))
    xn = x / (rms + eps) * g1[0]

    q = xn @ wq
    k = xn @ wk
    v = xn @ wv
    causal = jnp.asarray(np.tril(np.ones((T, T), dtype=bool)))
    outs = []
    for i in range(kv_heads):
        qi = q[:, :, i * group:(i + 1) * group]
        ki = jnp.tile(k[:, :, i * head_dim:(i + 1) * head_dim], (1, 1, repeat))
        vi = jnp.tile(v[:, :, i * head_dim:(i + 1) * head_dim], (1, 1, repeat))
        qi = _rope_ref(qi, cosf, sinf)
        ki = _rope_ref(ki, cosf, sinf)
        s = jnp.einsum('btd,bsd->bts', qi, ki) * scale
        s = jnp.where(causal, s, -1e30)
        p = jax.nn.softmax(s, axis=-1)
        outs.append(jnp.einsum('bts,bsd->btd', p, vi))
    attn = jnp.concatenate(outs, axis=-1) @ wo
    h = xn + attn

    rms2 = jnp.sqrt(jnp.mean(h * h, axis=1, keepdims=True))
    hn = h / (rms2 + eps) * g2[0]

    z = (hn @ wu) * (hn @ wg)
    return hn + jax.nn.silu(z) @ wd


# ----------------------------------------------------------------------------
# Main
# ----------------------------------------------------------------------------
if __name__ == "__main__":
    # Small, consistent shapes: n_heads must be 3*kv_heads (hard-coded
    # repeat(1,1,3)) and n_embed must equal n_heads*head_dim.
    B, T = 2, 8
    head_dim, kv_heads, n_heads = 8, 2, 6
    n_embed = n_heads * head_dim          # 48
    hidden_size = 64
    max_len = 16
    eps = 1e-5
    assert T < max_len

    repeat = n_heads // kv_heads          # 3
    group = repeat * head_dim             # 24

    key = jax.random.PRNGKey(0)
    kx, kq, kk, kv, ko, kg, ku, kd = jax.random.split(key, 8)

    def w(k, shape):
        return 0.02 * jax.random.normal(k, shape, jnp.float32)

    x = jax.random.normal(kx, (B, T, n_embed), jnp.float32)

    g1 = jnp.ones((1, n_embed), jnp.float32)
    g2 = jnp.ones((1, n_embed), jnp.float32)
    wq = w(kq, (n_embed, n_heads * head_dim))
    wk = w(kk, (n_embed, kv_heads * head_dim))
    wv = w(kv, (n_embed, kv_heads * head_dim))
    wo = w(ko, (n_heads * head_dim, n_embed))
    wg = w(kg, (n_embed, hidden_size))
    wu = w(ku, (n_embed, hidden_size))
    wd = w(kd, (hidden_size, n_embed))

    # Deterministic standard RoPE tables for dim = group (applied per kv-group).
    half = group // 2
    inv_freq = 1.0 / (10000.0 ** (2.0 * np.arange(half) / group))
    ang = np.arange(T)[:, None] * inv_freq[None, :]               # (T, half)
    cosf = jnp.asarray(np.concatenate([np.cos(ang), np.cos(ang)], -1),
                       jnp.float32)                               # (T, group)
    sinf = jnp.asarray(np.concatenate([np.sin(ang), np.sin(ang)], -1),
                       jnp.float32)

    params = (g1, g2, wq, wk, wv, wo, wg, wu, wd, cosf, sinf)

    out = decoder_forward(x, params, head_dim=head_dim, kv_heads=kv_heads,
                          n_heads=n_heads, eps=eps)
    out = jax.block_until_ready(out)

    ref = decoder_ref(x, params, head_dim=head_dim, kv_heads=kv_heads,
                      n_heads=n_heads, eps=eps)
    # bf16 matmul inputs + approx reciprocals -> slightly relaxed tolerance.
    np.testing.assert_allclose(np.asarray(out), np.asarray(ref),
                               rtol=2e-2, atol=2e-3)

    print("KERNEL_OK")
</pallas_src>

<mosaic_0001>
module attributes {stable_mosaic.version = 11 : i64} {
  func.func @decoder_kernel(%arg0: i32, %arg1: memref<1x8x48xf32, #tpu.memory_space<vmem>>, %arg2: memref<1x48xf32, #tpu.memory_space<vmem>>, %arg3: memref<1x48xf32, #tpu.memory_space<vmem>>, %arg4: memref<2x48x24xbf16, #tpu.memory_space<vmem>>, %arg5: memref<2x48x8xbf16, #tpu.memory_space<vmem>>, %arg6: memref<2x48x8xbf16, #tpu.memory_space<vmem>>, %arg7: memref<2x24x48xbf16, #tpu.memory_space<vmem>>, %arg8: memref<48x64xbf16, #tpu.memory_space<vmem>>, %arg9: memref<48x64xbf16, #tpu.memory_space<vmem>>, %arg10: memref<64x48xbf16, #tpu.memory_space<vmem>>, %arg11: memref<8x24xf32, #tpu.memory_space<vmem>>, %arg12: memref<8x24xf32, #tpu.memory_space<vmem>>, %arg13: memref<1x8x128xf32, #tpu.memory_space<vmem>>) attributes {dimension_semantics = [#tpu.dimension_semantics<parallel>], iteration_bounds = array<i64: 2>, scalar_prefetch = 0 : i64, scratch_operands = 0 : i64, tpu.core_type = #tpu.core_type<tc>, window_params = [{transform_indices = @transform_0, window_bounds = array<i64: 1, 8, 48>}, {pipeline_mode = #tpu.pipeline_mode<synchronous>, transform_indices = @transform_1, window_bounds = array<i64: 1, 48>}, {pipeline_mode = #tpu.pipeline_mode<synchronous>, transform_indices = @transform_2, window_bounds = array<i64: 1, 48>}, {pipeline_mode = #tpu.pipeline_mode<synchronous>, transform_indices = @transform_3, window_bounds = array<i64: 2, 48, 24>}, {pipeline_mode = #tpu.pipeline_mode<synchronous>, transform_indices = @transform_4, window_bounds = array<i64: 2, 48, 8>}, {pipeline_mode = #tpu.pipeline_mode<synchronous>, transform_indices = @transform_5, window_bounds = array<i64: 2, 48, 8>}, {pipeline_mode = #tpu.pipeline_mode<synchronous>, transform_indices = @transform_6, window_bounds = array<i64: 2, 24, 48>}, {pipeline_mode = #tpu.pipeline_mode<synchronous>, transform_indices = @transform_7, window_bounds = array<i64: 48, 64>}, {pipeline_mode = #tpu.pipeline_mode<synchronous>, transform_indices = @transform_8, window_bounds = array<i64: 48, 64>}, {pipeline_mode = #tpu.pipeline_mode<synchronous>, transform_indices = @transform_9, window_bounds = array<i64: 64, 48>}, {pipeline_mode = #tpu.pipeline_mode<synchronous>, transform_indices = @transform_10, window_bounds = array<i64: 8, 24>}, {pipeline_mode = #tpu.pipeline_mode<synchronous>, transform_indices = @transform_11, window_bounds = array<i64: 8, 24>}, {transform_indices = @transform_12, window_bounds = array<i64: 1, 8, 128>}]} {
    %c0 = arith.constant 0 : index
    %c0_0 = arith.constant 0 : index
    %c0_1 = arith.constant 0 : index
    %0 = vector.load %arg1[%c0, %c0_0, %c0_1] : memref<1x8x48xf32, #tpu.memory_space<vmem>>, vector<1x8x48xf32>
    %1 = vector.shape_cast %0 : vector<1x8x48xf32> to vector<8x48xf32>
    %2 = arith.mulf %1, %1 : vector<8x48xf32>
    %cst = arith.constant dense<0.000000e+00> : vector<48xf32>
    %3 = vector.multi_reduction <add>, %2, %cst [0] : vector<8x48xf32> to vector<48xf32>
    %4 = vector.shape_cast %3 : vector<48xf32> to vector<1x48xf32>
    %cst_2 = arith.constant 8.000000e+00 : f32
    %5 = vector.broadcast %cst_2 : f32 to vector<1x48xf32>
    %6 = arith.divf %4, %5 : vector<1x48xf32>
    %7 = math.sqrt %6 : vector<1x48xf32>
    %cst_3 = arith.constant 9.99999974E-6 : f32
    %8 = vector.broadcast %cst_3 : f32 to vector<1x48xf32>
    %9 = arith.addf %7, %8 : vector<1x48xf32>
    %10 = tpu.reciprocal %9 {approx = true} : vector<1x48xf32> -> vector<1x48xf32>
    %11 = vector.broadcast %10 : vector<1x48xf32> to vector<8x48xf32>
    %12 = arith.mulf %1, %11 : vector<8x48xf32>
    %c0_4 = arith.constant 0 : index
    %c0_5 = arith.constant 0 : index
    %13 = vector.load %arg2[%c0_4, %c0_5] : memref<1x48xf32, #tpu.memory_space<vmem>>, vector<1x48xf32>
    %14 = vector.broadcast %13 : vector<1x48xf32> to vector<8x48xf32>
    %15 = arith.mulf %12, %14 : vector<8x48xf32>
    %16 = arith.truncf %15 : vector<8x48xf32> to vector<8x48xbf16>
    %17 = vector.shape_cast %16 : vector<8x48xbf16> to vector<1x8x48xbf16>
    %18 = vector.shape_cast %17 : vector<1x8x48xbf16> to vector<1x8x48xbf16>
    %19 = vector.broadcast %18 : vector<1x8x48xbf16> to vector<2x8x48xbf16>
    %c0_6 = arith.constant 0 : index
    %c0_7 = arith.constant 0 : index
    %c0_8 = arith.constant 0 : index
    %20 = vector.load %arg4[%c0_6, %c0_7, %c0_8] : memref<2x48x24xbf16, #tpu.memory_space<vmem>>, vector<2x48x24xbf16>
    "tpu.trace_start"() <{level = 10 : i32, message = "htc,hcg->htg"}> : () -> ()
    %cst_9 = arith.constant dense<0.000000e+00> : vector<2x8x24xf32>
    %21 = tpu.matmul %19, %20, %cst_9 {dimension_numbers = #tpu.dot_dimension_numbers<[2], [1], [1], [2], [0, 0, 0, 1, 1, 2], [0], [0]>} : vector<2x8x48xbf16>, vector<2x48x24xbf16>, vector<2x8x24xf32> -> vector<2x8x24xf32>
    "tpu.trace_stop"() : () -> ()
    %c0_10 = arith.constant 0 : index
    %c0_11 = arith.constant 0 : index
    %c0_12 = arith.constant 0 : index
    %22 = vector.load %arg5[%c0_10, %c0_11, %c0_12] : memref<2x48x8xbf16, #tpu.memory_space<vmem>>, vector<2x48x8xbf16>
    "tpu.trace_start"() <{level = 10 : i32, message = "htc,hcd->htd"}> : () -> ()
    %cst_13 = arith.constant dense<0.000000e+00> : vector<2x8x8xf32>
    %23 = tpu.matmul %19, %22, %cst_13 {dimension_numbers = #tpu.dot_dimension_numbers<[2], [1], [1], [2], [0, 0, 0, 1, 1, 2], [0], [0]>} : vector<2x8x48xbf16>, vector<2x48x8xbf16>, vector<2x8x8xf32> -> vector<2x8x8xf32>
    "tpu.trace_stop"() : () -> ()
    %c0_14 = arith.constant 0 : index
    %c0_15 = arith.constant 0 : index
    %c0_16 = arith.constant 0 : index
    %24 = vector.load %arg6[%c0_14, %c0_15, %c0_16] : memref<2x48x8xbf16, #tpu.memory_space<vmem>>, vector<2x48x8xbf16>
    "tpu.trace_start"() <{level = 10 : i32, message = "htc,hcd->htd"}> : () -> ()
    %cst_17 = arith.constant dense<0.000000e+00> : vector<2x8x8xf32>
    %25 = tpu.matmul %19, %24, %cst_17 {dimension_numbers = #tpu.dot_dimension_numbers<[2], [1], [1], [2], [0, 0, 0, 1, 1, 2], [0], [0]>} : vector<2x8x48xbf16>, vector<2x48x8xbf16>, vector<2x8x8xf32> -> vector<2x8x8xf32>
    "tpu.trace_stop"() : () -> ()
    %26 = tpu.concatenate %23, %23, %23 in 2 : vector<2x8x8xf32>, vector<2x8x8xf32>, vector<2x8x8xf32> -> vector<2x8x24xf32>
    %27 = tpu.concatenate %25, %25, %25 in 2 : vector<2x8x8xf32>, vector<2x8x8xf32>, vector<2x8x8xf32> -> vector<2x8x24xf32>
    %c0_18 = arith.constant 0 : index
    %c0_19 = arith.constant 0 : index
    %28 = vector.load %arg11[%c0_18, %c0_19] : memref<8x24xf32, #tpu.memory_space<vmem>>, vector<8x24xf32>
    %c0_20 = arith.constant 0 : index
    %c0_21 = arith.constant 0 : index
    %29 = vector.load %arg12[%c0_20, %c0_21] : memref<8x24xf32, #tpu.memory_space<vmem>>, vector<8x24xf32>
    %30 = vector.extract_strided_slice %21 {offsets = [0, 0, 12], sizes = [2, 8, 12], strides = [1, 1, 1]} : vector<2x8x24xf32> to vector<2x8x12xf32>
    %cst_22 = arith.constant 0.000000e+00 : f32
    %31 = vector.broadcast %cst_22 : f32 to vector<2x8x12xf32>
    %32 = arith.subf %31, %30 : vector<2x8x12xf32>
    %33 = vector.extract_strided_slice %21 {offsets = [0, 0, 0], sizes = [2, 8, 12], strides = [1, 1, 1]} : vector<2x8x24xf32> to vector<2x8x12xf32>
    %34 = tpu.concatenate %32, %33 in 2 : vector<2x8x12xf32>, vector<2x8x12xf32> -> vector<2x8x24xf32>
    %35 = vector.shape_cast %28 : vector<8x24xf32> to vector<1x8x24xf32>
    %36 = vector.broadcast %35 : vector<1x8x24xf32> to vector<2x8x24xf32>
    %37 = arith.mulf %21, %36 : vector<2x8x24xf32>
    %38 = vector.shape_cast %29 : vector<8x24xf32> to vector<1x8x24xf32>
    %39 = vector.broadcast %38 : vector<1x8x24xf32> to vector<2x8x24xf32>
    %40 = arith.mulf %34, %39 : vector<2x8x24xf32>
    %41 = arith.addf %37, %40 : vector<2x8x24xf32>
    %42 = vector.extract_strided_slice %26 {offsets = [0, 0, 12], sizes = [2, 8, 12], strides = [1, 1, 1]} : vector<2x8x24xf32> to vector<2x8x12xf32>
    %cst_23 = arith.constant 0.000000e+00 : f32
    %43 = vector.broadcast %cst_23 : f32 to vector<2x8x12xf32>
    %44 = arith.subf %43, %42 : vector<2x8x12xf32>
    %45 = vector.extract_strided_slice %26 {offsets = [0, 0, 0], sizes = [2, 8, 12], strides = [1, 1, 1]} : vector<2x8x24xf32> to vector<2x8x12xf32>
    %46 = tpu.concatenate %44, %45 in 2 : vector<2x8x12xf32>, vector<2x8x12xf32> -> vector<2x8x24xf32>
    %47 = vector.shape_cast %28 : vector<8x24xf32> to vector<1x8x24xf32>
    %48 = vector.broadcast %47 : vector<1x8x24xf32> to vector<2x8x24xf32>
    %49 = arith.mulf %26, %48 : vector<2x8x24xf32>
    %50 = vector.shape_cast %29 : vector<8x24xf32> to vector<1x8x24xf32>
    %51 = vector.broadcast %50 : vector<1x8x24xf32> to vector<2x8x24xf32>
    %52 = arith.mulf %46, %51 : vector<2x8x24xf32>
    %53 = arith.addf %49, %52 : vector<2x8x24xf32>
    %54 = arith.truncf %41 : vector<2x8x24xf32> to vector<2x8x24xbf16>
    %55 = arith.truncf %53 : vector<2x8x24xf32> to vector<2x8x24xbf16>
    "tpu.trace_start"() <{level = 10 : i32, message = "hqd,hkd->hqk"}> : () -> ()
    %cst_24 = arith.constant dense<0.000000e+00> : vector<2x8x8xf32>
    %56 = tpu.matmul %54, %55, %cst_24 {dimension_numbers = #tpu.dot_dimension_numbers<[2], [2], [1], [1], [0, 0, 0, 1, 1, 1], [0], [0]>} : vector<2x8x24xbf16>, vector<2x8x24xbf16>, vector<2x8x8xf32> -> vector<2x8x8xf32>
    "tpu.trace_stop"() : () -> ()
    %cst_25 = arith.constant 0.204124153 : f32
    %57 = vector.broadcast %cst_25 : f32 to vector<2x8x8xf32>
    %58 = arith.mulf %56, %57 : vector<2x8x8xf32>
    %59 = tpu.iota {dimensions = array<i32: 1>} : vector<1x8x8xi32>
    %60 = tpu.iota {dimensions = array<i32: 2>} : vector<1x8x8xi32>
    %61 = arith.cmpi sle, %60, %59 : vector<1x8x8xi32>
    %cst_26 = arith.constant -1.000000e+30 : f32
    %62 = vector.shape_cast %61 : vector<1x8x8xi1> to vector<1x8x8xi1>
    %63 = vector.broadcast %62 : vector<1x8x8xi1> to vector<2x8x8xi1>
    %64 = vector.broadcast %cst_26 : f32 to vector<2x8x8xf32>
    %65 = arith.select %63, %58, %64 : vector<2x8x8xi1>, vector<2x8x8xf32>
    %cst_27 = arith.constant dense<0xFF800000> : vector<2x8xf32>
    %66 = vector.multi_reduction <maximumf>, %65, %cst_27 [2] : vector<2x8x8xf32> to vector<2x8xf32>
    %67 = vector.shape_cast %66 : vector<2x8xf32> to vector<2x8x1xf32>
    %68 = vector.broadcast %67 : vector<2x8x1xf32> to vector<2x8x8xf32>
    %69 = arith.subf %65, %68 : vector<2x8x8xf32>
    %70 = math.exp %69 : vector<2x8x8xf32>
    %cst_28 = arith.constant dense<0.000000e+00> : vector<2x8xf32>
    %71 = vector.multi_reduction <add>, %70, %cst_28 [2] : vector<2x8x8xf32> to vector<2x8xf32>
    %72 = vector.shape_cast %71 : vector<2x8xf32> to vector<2x8x1xf32>
    %73 = tpu.reciprocal %72 {approx = true} : vector<2x8x1xf32> -> vector<2x8x1xf32>
    %74 = vector.broadcast %73 : vector<2x8x1xf32> to vector<2x8x8xf32>
    %75 = arith.mulf %70, %74 : vector<2x8x8xf32>
    %76 = arith.truncf %75 : vector<2x8x8xf32> to vector<2x8x8xbf16>
    %77 = arith.truncf %27 : vector<2x8x24xf32> to vector<2x8x24xbf16>
    "tpu.trace_start"() <{level = 10 : i32, message = "hqk,hkd->hqd"}> : () -> ()
    %cst_29 = arith.constant dense<0.000000e+00> : vector<2x8x24xf32>
    %78 = tpu.matmul %76, %77, %cst_29 {dimension_numbers = #tpu.dot_dimension_numbers<[2], [1], [1], [2], [0, 0, 0, 1, 1, 2], [0], [0]>} : vector<2x8x8xbf16>, vector<2x8x24xbf16>, vector<2x8x24xf32> -> vector<2x8x24xf32>
    "tpu.trace_stop"() : () -> ()
    %79 = arith.truncf %78 : vector<2x8x24xf32> to vector<2x8x24xbf16>
    %c0_30 = arith.constant 0 : index
    %c0_31 = arith.constant 0 : index
    %c0_32 = arith.constant 0 : index
    %80 = vector.load %arg7[%c0_30, %c0_31, %c0_32] : memref<2x24x48xbf16, #tpu.memory_space<vmem>>, vector<2x24x48xbf16>
    "tpu.trace_start"() <{level = 10 : i32, message = "htg,hgc->htc"}> : () -> ()
    %cst_33 = arith.constant dense<0.000000e+00> : vector<2x8x48xf32>
    %81 = tpu.matmul %79, %80, %cst_33 {dimension_numbers = #tpu.dot_dimension_numbers<[2], [1], [1], [2], [0, 0, 0, 1, 1, 2], [0], [0]>} : vector<2x8x24xbf16>, vector<2x24x48xbf16>, vector<2x8x48xf32> -> vector<2x8x48xf32>
    "tpu.trace_stop"() : () -> ()
    %cst_34 = arith.constant dense<0.000000e+00> : vector<8x48xf32>
    %82 = vector.multi_reduction <add>, %81, %cst_34 [0] : vector<2x8x48xf32> to vector<8x48xf32>
    %83 = arith.addf %15, %82 : vector<8x48xf32>
    %84 = arith.mulf %83, %83 : vector<8x48xf32>
    %cst_35 = arith.constant dense<0.000000e+00> : vector<48xf32>
    %85 = vector.multi_reduction <add>, %84, %cst_35 [0] : vector<8x48xf32> to vector<48xf32>
    %86 = vector.shape_cast %85 : vector<48xf32> to vector<1x48xf32>
    %cst_36 = arith.constant 8.000000e+00 : f32
    %87 = vector.broadcast %cst_36 : f32 to vector<1x48xf32>
    %88 = arith.divf %86, %87 : vector<1x48xf32>
    %89 = math.sqrt %88 : vector<1x48xf32>
    %cst_37 = arith.constant 9.99999974E-6 : f32
    %90 = vector.broadcast %cst_37 : f32 to vector<1x48xf32>
    %91 = arith.addf %89, %90 : vector<1x48xf32>
    %92 = tpu.reciprocal %91 {approx = true} : vector<1x48xf32> -> vector<1x48xf32>
    %93 = vector.broadcast %92 : vector<1x48xf32> to vector<8x48xf32>
    %94 = arith.mulf %83, %93 : vector<8x48xf32>
    %c0_38 = arith.constant 0 : index
    %c0_39 = arith.constant 0 : index
    %95 = vector.load %arg3[%c0_38, %c0_39] : memref<1x48xf32, #tpu.memory_space<vmem>>, vector<1x48xf32>
    %96 = vector.broadcast %95 : vector<1x48xf32> to vector<8x48xf32>
    %97 = arith.mulf %94, %96 : vector<8x48xf32>
    %98 = arith.truncf %97 : vector<8x48xf32> to vector<8x48xbf16>
    %c0_40 = arith.constant 0 : index
    %c0_41 = arith.constant 0 : index
    %99 = vector.load %arg8[%c0_40, %c0_41] : memref<48x64xbf16, #tpu.memory_space<vmem>>, vector<48x64xbf16>
    %cst_42 = arith.constant dense<0.000000e+00> : vector<8x64xf32>
    %100 = tpu.matmul %98, %99, %cst_42 {dimension_numbers = #tpu.dot_dimension_numbers<[1], [0], [0], [1], [0, 0, 1, 1], [], []>} : vector<8x48xbf16>, vector<48x64xbf16>, vector<8x64xf32> -> vector<8x64xf32>
    %c0_43 = arith.constant 0 : index
    %c0_44 = arith.constant 0 : index
    %101 = vector.load %arg9[%c0_43, %c0_44] : memref<48x64xbf16, #tpu.memory_space<vmem>>, vector<48x64xbf16>
    %cst_45 = arith.constant dense<0.000000e+00> : vector<8x64xf32>
    %102 = tpu.matmul %98, %101, %cst_45 {dimension_numbers = #tpu.dot_dimension_numbers<[1], [0], [0], [1], [0, 0, 1, 1], [], []>} : vector<8x48xbf16>, vector<48x64xbf16>, vector<8x64xf32> -> vector<8x64xf32>
    %103 = arith.mulf %102, %100 : vector<8x64xf32>
    %104 = arith.negf %103 : vector<8x64xf32>
    %105 = math.exp %104 : vector<8x64xf32>
    %cst_46 = arith.constant 1.000000e+00 : f32
    %106 = vector.broadcast %cst_46 : f32 to vector<8x64xf32>
    %107 = arith.addf %106, %105 : vector<8x64xf32>
    %108 = arith.divf %106, %107 : vector<8x64xf32>
    %109 = arith.mulf %103, %108 : vector<8x64xf32>
    %110 = arith.truncf %109 : vector<8x64xf32> to vector<8x64xbf16>
    %c0_47 = arith.constant 0 : index
    %c0_48 = arith.constant 0 : index
    %111 = vector.load %arg10[%c0_47, %c0_48] : memref<64x48xbf16, #tpu.memory_space<vmem>>, vector<64x48xbf16>
    %cst_49 = arith.constant dense<0.000000e+00> : vector<8x48xf32>
    %112 = tpu.matmul %110, %111, %cst_49 {dimension_numbers = #tpu.dot_dimension_numbers<[1], [0], [0], [1], [0, 0, 1, 1], [], []>} : vector<8x64xbf16>, vector<64x48xbf16>, vector<8x48xf32> -> vector<8x48xf32>
    %113 = arith.addf %97, %112 : vector<8x48xf32>
    %cst_50 = arith.constant 0.000000e+00 : f32
    %114 = vector.broadcast %cst_50 : f32 to vector<8x80xf32>
    %115 = tpu.concatenate %113, %114 in 1 : vector<8x48xf32>, vector<8x80xf32> -> vector<8x128xf32>
    %c0_51 = arith.constant 0 : index
    %c0_52 = arith.constant 0 : index
    %c0_53 = arith.constant 0 : index
    %116 = vector.load %arg13[%c0_51, %c0_52, %c0_53] : memref<1x8x128xf32, #tpu.memory_space<vmem>>, vector<1x8x128xf32>
    %117 = vector.shape_cast %116 : vector<1x8x128xf32> to vector<8x128xf32>
    %118 = vector.shape_cast %115 : vector<8x128xf32> to vector<1x8x128xf32>
    tpu.vector_store %arg13[%c0_51, %c0_52, %c0_53], %118 {strides = array<i32>} : memref<1x8x128xf32, #tpu.memory_space<vmem>>, vector<1x8x128xf32>,
    return
  }
  func.func @transform_0(%arg0: i32) -> (i32, i32, i32) {
    %c0_i32 = arith.constant 0 : i32
    %c0_i32_0 = arith.constant 0 : i32
    %c0_i32_1 = arith.constant 0 : i32
    return %arg0, %c0_i32, %c0_i32_0 : i32, i32, i32
  }
  func.func @transform_1(%arg0: i32) -> (i32, i32) {
    %c0_i32 = arith.constant 0 : i32
    %c0_i32_0 = arith.constant 0 : i32
    %c0_i32_1 = arith.constant 0 : i32
    return %c0_i32, %c0_i32_0 : i32, i32
  }
  func.func @transform_2(%arg0: i32) -> (i32, i32) {
    %c0_i32 = arith.constant 0 : i32
    %c0_i32_0 = arith.constant 0 : i32
    %c0_i32_1 = arith.constant 0 : i32
    return %c0_i32, %c0_i32_0 : i32, i32
  }
  func.func @transform_3(%arg0: i32) -> (i32, i32, i32) {
    %c0_i32 = arith.constant 0 : i32
    %c0_i32_0 = arith.constant 0 : i32
    %c0_i32_1 = arith.constant 0 : i32
    %c0_i32_2 = arith.constant 0 : i32
    return %c0_i32, %c0_i32_0, %c0_i32_1 : i32, i32, i32
  }
  func.func @transform_4(%arg0: i32) -> (i32, i32, i32) {
    %c0_i32 = arith.constant 0 : i32
    %c0_i32_0 = arith.constant 0 : i32
    %c0_i32_1 = arith.constant 0 : i32
    %c0_i32_2 = arith.constant 0 : i32
    return %c0_i32, %c0_i32_0, %c0_i32_1 : i32, i32, i32
  }
  func.func @transform_5(%arg0: i32) -> (i32, i32, i32) {
    %c0_i32 = arith.constant 0 : i32
    %c0_i32_0 = arith.constant 0 : i32
    %c0_i32_1 = arith.constant 0 : i32
    %c0_i32_2 = arith.constant 0 : i32
    return %c0_i32, %c0_i32_0, %c0_i32_1 : i32, i32, i32
  }
  func.func @transform_6(%arg0: i32) -> (i32, i32, i32) {
    %c0_i32 = arith.constant 0 : i32
    %c0_i32_0 = arith.constant 0 : i32
    %c0_i32_1 = arith.constant 0 : i32
    %c0_i32_2 = arith.constant 0 : i32
    return %c0_i32, %c0_i32_0, %c0_i32_1 : i32, i32, i32
  }
  func.func @transform_7(%arg0: i32) -> (i32, i32) {
    %c0_i32 = arith.constant 0 : i32
    %c0_i32_0 = arith.constant 0 : i32
    %c0_i32_1 = arith.constant 0 : i32
    return %c0_i32, %c0_i32_0 : i32, i32
  }
  func.func @transform_8(%arg0: i32) -> (i32, i32) {
    %c0_i32 = arith.constant 0 : i32
    %c0_i32_0 = arith.constant 0 : i32
    %c0_i32_1 = arith.constant 0 : i32
    return %c0_i32, %c0_i32_0 : i32, i32
  }
  func.func @transform_9(%arg0: i32) -> (i32, i32) {
    %c0_i32 = arith.constant 0 : i32
    %c0_i32_0 = arith.constant 0 : i32
    %c0_i32_1 = arith.constant 0 : i32
    return %c0_i32, %c0_i32_0 : i32, i32
  }
  func.func @transform_10(%arg0: i32) -> (i32, i32) {
    %c0_i32 = arith.constant 0 : i32
    %c0_i32_0 = arith.constant 0 : i32
    %c0_i32_1 = arith.constant 0 : i32
    return %c0_i32, %c0_i32_0 : i32, i32
  }
  func.func @transform_11(%arg0: i32) -> (i32, i32) {
    %c0_i32 = arith.constant 0 : i32
    %c0_i32_0 = arith.constant 0 : i32
    %c0_i32_1 = arith.constant 0 : i32
    return %c0_i32, %c0_i32_0 : i32, i32
  }
  func.func @transform_12(%arg0: i32) -> (i32, i32, i32) {
    %c0_i32 = arith.constant 0 : i32
    %c0_i32_0 = arith.constant 0 : i32
    %c0_i32_1 = arith.constant 0 : i32
    return %arg0, %c0_i32, %c0_i32_0 : i32, i32, i32
  }
}

</mosaic_0001>

<bundles_post_ra>
// kernel: tpu_custom_call.1
= control target key start
LH: loop header
LB: loop body
LE: loop exit
PB: predicated region body
PF: predicated region fallthrough
CT: control target
= control target key end

     0   :  { %s2420_s0 = inlined_call_operand.vmem [shape: f32[2,8,48], index: 0, kind: input, shape index: {}]   ;;  %s2421_s1 = inlined_call_operand.vmem [shape: f32[1,48], index: 1, kind: input, shape index: {}]   ;;  %s2422_s2 = inlined_call_operand.vmem [shape: f32[1,48], index: 2, kind: input, shape index: {}]   ;;  %s2423_s3 = inlined_call_operand.vmem [shape: bf16[2,48,24], index: 3, kind: input, shape index: {}]   ;;  %s2424_s4 = inlined_call_operand.vmem [shape: bf16[2,48,8], index: 4, kind: input, shape index: {}]   ;;  %s2425_s5 = inlined_call_operand.vmem [shape: bf16[2,48,8], index: 5, kind: input, shape index: {}]   ;;  %s2426_s6 = inlined_call_operand.vmem [shape: bf16[2,24,48], index: 6, kind: input, shape index: {}]   ;;  %s2427_s7 = inlined_call_operand.vmem [shape: bf16[48,64], index: 7, kind: input, shape index: {}]   ;;  %s2428_s8 = inlined_call_operand.vmem [shape: bf16[48,64], index: 8, kind: input, shape index: {}]   ;;  %s2429_s9 = inlined_call_operand.vmem [shape: bf16[64,48], index: 9, kind: input, shape index: {}]   ;;  %s2430_s10 = inlined_call_operand.vmem [shape: f32[8,24], index: 10, kind: input, shape index: {}]   ;;  %s2431_s11 = inlined_call_operand.vmem [shape: f32[8,24], index: 11, kind: input, shape index: {}]   ;;  %s2432_s12 = inlined_call_operand.hbm [shape: f32[2,8,128], index: 12, kind: output, shape index: {}]  }
   0x1   :  { %2433 = sst [smem:[#allocation5_spill]] %s2420_s0 }
   0x2   :  { %17 = vsyncpa [#allocation3], 0 }
   0x3   :  { %19 = vsyncpa [#allocation3 + $0x1], 0  ;;  %s2076_s21 = smov 0   ;;  %s2078_s22 = smov 0  }
   0x4   :  { %s2080_s23 = smov 0   ;;  %s2082_s24 = smov 0  }
   0x5 LB: > { %s2097_s25 = sadd.s32 4294967295, %s2002_s24   ;;  %s1590_s26 = sadd.s32 4294967294, %s2002_s24   ;;  %s2002_s24 = sphi %s2082_s24, %s2440_s24   ;;  %s1998_s23 = sphi %s2080_s23, %s2439_s23   ;;  %s1994_s22 = sphi %s2078_s22, %s2438_s22   ;;  %s1990_s21 = sphi %s2076_s21, %s2437_s21  }
   0x6   : > { %s2101_s27 = sadd.s32 1, %s2002_s24   ;;  %s289_s28 = sadd.s32 1, %s1998_s23 }
   0x7   : > { %s286_s29 = ssub.s32 %s2002_s24, %s2101_s27  ;;  %p299_p0 = scmp.ne.s32.totalorder %s1998_s23, %s1994_s22 }
   0x8   : > { %p287_p1 = scmp.eq.s32.totalorder %s286_s29, 0  ;;  %p300_p2 = scmp.eq.s32.totalorder %s2097_s25, 1 }
   0x9   : > { %p305_p3 = scmp.ne.s32.totalorder %s1994_s22, %s1990_s21  ;;  %p306_p4 = scmp.eq.s32.totalorder %s1590_s26, 1 }
   0xa   : > { %s2112_s30 = scalar_select %p287_p1, %s1998_s23, %s289_s28  }
   0xb   : > { %p2114_p5 = por %p300_p2, %p299_p0  ;;  %p2118_p6 = por %p306_p4, %p305_p3 }
   0xc   : > { %p1593_p7 = scmp.ge.s32.totalorder %s2002_s24, 1  ;;  %p364_p8 = scmp.lt.s32.totalorder %s2002_s24, 3 }
   0xe   : > { %p365_p9 = pnand %p1593_p7, %p364_p8 }
   0xf   : > { %v1888_v0 = vld [vmem:[%s2423_s3] sm:$0xff] (!%p365_p9)   ;;  %v2004_v1 = vmov (!%p365_p9), 0.0   ;;  %v1889_v2 = vld [vmem:[%s2423_s3 + $0x18] sm:$0xff] (!%p365_p9)   ;;  %v1890_v3 = vld [vmem:[%s2423_s3 + $0x8] sm:$0xff] (!%p365_p9)   ;;  %vm2005_vm0 = vmmov (!%p365_p9), 0   ;;  %p405_p10 = scmp.lt.s32.totalorder (!%p365_p9), %s2097_s25, 1 }
  0x10   : > { %368 = sbr.rel (%p365_p9) target bundleno = 2049 (0x801), region = 68  ;;  %1701 = vmatprep.subr.bf16.mxu0 (!%p365_p9), %v2004_v1  ;;  %1711 = vmatprep.subr.bf16.mxu1 (!%p365_p9), %v2004_v1  ;;  %v1891_v4 = vld [vmem:[%s2423_s3 + $0x20] sm:$0xff] (!%p365_p9)   ;;  %v1892_v5 = vld [vmem:[%s2423_s3 + $0x10] sm:$0xff] (!%p365_p9)   ;;  %v1893_v6 = vld [vmem:[%s2423_s3 + $0x28] sm:$0xff] (!%p365_p9)   ;;  %s2436_s0 = sld [smem:[#allocation5_spill]] (!%p365_p9)  ;;  %vm412_vm1 = vcmask (!%p365_p9), 392192  }
  0x11   : > { %1702 = vmatpush3.bf16.msra.mxu0 (!%p365_p9), %v1888_v0  ;;  %1707 = vmatprep.mubr.msk.bf16.mxu0 (!%p365_p9), %vm2005_vm0, %v2004_v1  ;;  %v1596_v24 = vld [vmem:[%s2421_s1] ss:$0 sm:$0xff] (!%p365_p9)  ;;  %v1895_v28 = vld [vmem:[%s2424_s4 + $0x18] sm:$0xff] (!%p365_p9)   ;;  %v1896_v30 = vld [vmem:[%s2424_s4 + $0x8] sm:$0xff] (!%p365_p9)   ;;  %s2007_s20 = smov (!%p365_p9), 16   ;;  %vm842_vm4 = vcmask (!%p365_p9), 64512  }
  0x12   : > { %1712 = vmatpush3.bf16.msra.mxu1 (!%p365_p9), %v1889_v2  ;;  %1703 = vmatprep.subr.bf16.mxu0 (!%p365_p9), %v2004_v1  ;;  %v1894_v27 = vld [vmem:[%s2424_s4] sm:$0xff] (!%p365_p9)   ;;  %v1898_v32 = vld [vmem:[%s2424_s4 + $0x10] sm:$0xff] (!%p365_p9)   ;;  %v1899_v33 = vld [vmem:[%s2424_s4 + $0x28] sm:$0xff] (!%p365_p9)   ;;  %vm845_vm5 = vcmask (!%p365_p9), 130048   ;;  %s2008_s17 = smov (!%p365_p9), 12   ;;  %s2009_s18 = smov (!%p365_p9), 116  }
  0x13   : > { %1713 = vmatprep.subr.bf16.mxu1 (!%p365_p9), %v2004_v1  ;;  %1717 = vmatprep.mubr.msk.bf16.mxu1 (!%p365_p9), %vm2005_vm0, %v2004_v1  ;;  %v1897_v31 = vld [vmem:[%s2424_s4 + $0x20] sm:$0xff] (!%p365_p9)   ;;  %v1900_v50 = vld [vmem:[%s2425_s5 + $0x18] sm:$0xff] (!%p365_p9)   ;;  %v1903_v53 = vld [vmem:[%s2425_s5 + $0x28] sm:$0xff] (!%p365_p9)   ;;  %vm886_vm6 = vcmask (!%p365_p9), 97280   ;;  %vm925_vm7 = vcmask (!%p365_p9), 195584   ;;  %vm1058_vm9 = vcmask (!%p365_p9), 1043456  }
  0x14   : > { %v1902_v51 = vld [vmem:[%s2425_s5] sm:$0xff] (!%p365_p9)   ;;  %v1904_v54 = vld [vmem:[%s2425_s5 + $0x8] sm:$0xff] (!%p365_p9)   ;;  %v1905_v55 = vld [vmem:[%s2425_s5 + $0x10] sm:$0xff] (!%p365_p9)   ;;  %vm1470_vm12 = vcmask (!%p365_p9), 523264   ;;  %s1647_s26 = sshll.u32 (!%p365_p9), %s2097_s25, 7 }
  0x15   : > { %1704 = vmatpush3.bf16.msra.mxu0 (!%p365_p9), %v1890_v3  ;;  %v1901_v52 = vld [vmem:[%s2425_s5 + $0x20] sm:$0xff] (!%p365_p9)  }
  0x16   : > { %1714 = vmatpush3.bf16.msra.mxu1 (!%p365_p9), %v1891_v4  ;;  %1705 = vmatprep.subr.bf16.mxu0 (!%p365_p9), %v2004_v1 }
  0x17   : > { %s406_s29 = scalar_select %p405_p10, %s2097_s25, 1  ;;  %1715 = vmatprep.subr.bf16.mxu1 %v2004_v1 }
  0x19   : > { %s1595_s19 = sshll.u32 %s406_s29, 3  ;;  %1706 = vmatpush3.bf16.msra.mxu0 %v1892_v5 }
  0x1a   : > { %s408_s28 = scalar_lea.vmem %s2436_s0, %s1595_s19  ;;  %1716 = vmatpush3.bf16.msra.mxu1 %v1893_v6  ;;  %1721 = vmatprep.subr.bf16.mxu0 %v2004_v1  ;;  %s2006_s19 = smov 8   ;;  %v867_v6 = vld [vmem:[%s2431_s11] sm:$0xff] }
  0x1b   : > { %v410_v7 = vld [vmem:[%s408_s28] sm:$0xff]  ;;  %1731 = vmatprep.subr.bf16.mxu1 %v2004_v1 }
  0x1c   : > { %v411_v8 = vmul.f32 %v410_v7, %v410_v7 }
  0x1e   : > { %v413_v9 = vsel %vm412_vm1, %v411_v8, 0.0  ;;  %v866_v8 = vld [vmem:[%s2430_s10] sm:$0xff] }
  0x1f   : > { %v414_v10 = vrot.slane %v413_v9, 4 }
  0x21   : > { %v415_v11 = vadd.f32 %v414_v10, %v413_v9 }
  0x23   : > { %v416_v12 = vrot.slane %v415_v11, 2 }
  0x25   : > { %v417_v13 = vadd.f32 %v416_v12, %v415_v11 }
  0x27   : > { %v418_v14 = vrot.slane %v417_v13, 1 }
  0x29   : > { %v419_v15 = vadd.f32 %v418_v14, %v417_v13 }
  0x2b   : > { %v421_v16 = vmul.f32 0.125, %v419_v15 }
  0x2d   : > { %1920 = vrsqrt.f32 %v421_v16  ;;  %vm424_vm2 = vcmp.eq.f32.partialorder %v421_v16, inf  ;;  %v427_v18 = vand.u32 2147483648, %v421_v16  ;;  %vm426_vm3 = vcmp.eq.f32.partialorder %v421_v16, 0.0 }
  0x37   : > { %v1921_v17 = vpop.eup %1920 }
  0x38   : > { %v423_v19 = vmul.f32 %v1921_v17, %v421_v16 }
  0x3a   : > { %v425_v20 = vsel %vm424_vm2, %v421_v16, %v423_v19 }
  0x3b   : > { %v428_v21 = vsel %vm426_vm3, %v427_v18, %v425_v20 }
  0x3c   : > { %v429_v22 = vadd.f32 1e-05, %v428_v21 }
  0x3e   : > { %1922 = vrcp.f32 %v429_v22 }
  0x48   : > { %v1923_v23 = vpop.eup %1922 }
  0x49   : > { %v431_v25 = vmul.f32 %v1923_v23, %v410_v7 }
  0x4b   : > { %v2163_v26 = vmul.f32 %v1596_v24, %v431_v25 }
  0x4d   : > { %v2173_v29 = vpack.c.bf16 %v2163_v26, %v2163_v26 }
  0x4f   : > { %1708 = vmatmul.mubr.msk.bf16.vlgmr.msra.gmra.mrb[0].mxu0 %vm412_vm1, %v2173_v29  ;;  %1718 = vmatmul.mubr.msk.bf16.vlgmr.msra.gmra.mrb[0].mxu1 %vm412_vm1, %v2173_v29 }
  0x50   : > { %1722 = vmatpush3.bf16.msra.mxu0 %v1894_v27  ;;  %1732 = vmatpush3.bf16.msra.mxu1 %v1895_v28 }
  0x51   : > { %1723 = vmatprep.subr.bf16.mxu0 %v2004_v1  ;;  %1733 = vmatprep.subr.bf16.mxu1 %v2004_v1 }
  0x52   : > { %1727 = vmatprep.mubr.msk.bf16.mxu0 %vm2005_vm0, %v2004_v1  ;;  %1737 = vmatprep.mubr.msk.bf16.mxu1 %vm2005_vm0, %v2004_v1 }
  0x54   : > { %1724 = vmatpush3.bf16.msra.mxu0 %v1896_v30  ;;  %1734 = vmatpush3.bf16.msra.mxu1 %v1897_v31 }
  0x55   : > { %1725 = vmatprep.subr.bf16.mxu0 %v2004_v1  ;;  %1735 = vmatprep.subr.bf16.mxu1 %v2004_v1 }
  0x58   : > { %1726 = vmatpush3.bf16.msra.mxu0 %v1898_v32  ;;  %1736 = vmatpush3.bf16.msra.mxu1 %v1899_v33 }
  0x59   : > { %1751 = vmatprep.subr.bf16.mxu1 %v2004_v1  ;;  %1741 = vmatprep.subr.bf16.mxu0 %v2004_v1 }
  0x5b   : > { %1728 = vmatmul.mubr.msk.bf16.vlgmr.msra.gmra.mrb[4].mxu0 %vm412_vm1, %v2173_v29  ;;  %1738 = vmatmul.mubr.msk.bf16.vlgmr.msra.gmra.mrb[4].mxu1 %vm412_vm1, %v2173_v29 }
  0x5c   : > { %1757 = vmatprep.mubr.msk.bf16.mxu1 %vm2005_vm0, %v2004_v1  ;;  %1747 = vmatprep.mubr.msk.bf16.mxu0 %vm2005_vm0, %v2004_v1 }
  0x5d   : > { %1752 = vmatpush3.bf16.msra.mxu1 %v1900_v50  ;;  %1742 = vmatpush3.bf16.msra.mxu0 %v1902_v51 }
  0x5e   : > { %1753 = vmatprep.subr.bf16.mxu1 %v2004_v1  ;;  %1743 = vmatprep.subr.bf16.mxu0 %v2004_v1 }
  0x61   : > { %1754 = vmatpush3.bf16.msra.mxu1 %v1901_v52  ;;  %1744 = vmatpush3.bf16.msra.mxu0 %v1904_v54 }
  0x62   : > { %1755 = vmatprep.subr.bf16.mxu1 %v2004_v1  ;;  %1745 = vmatprep.subr.bf16.mxu0 %v2004_v1 }
  0x65   : > { %1756 = vmatpush3.bf16.msra.mxu1 %v1903_v53  ;;  %1746 = vmatpush3.bf16.msra.mxu0 %v1905_v55 }
  0x66   : > { %1761 = vmatprep.subr.bf16.mxu1 %v2004_v1  ;;  %1773 = vmatprep.subr.bf16.mxu0 %v2004_v1 }
  0x68   : > { %1758 = vmatmul.mubr.msk.bf16.vlgmr.msra.gmra.mrb[8].mxu1 %vm412_vm1, %v2173_v29  ;;  %1748 = vmatmul.mubr.msk.bf16.vlgmr.msra.gmra.mrb[8].mxu0 %vm412_vm1, %v2173_v29 }
  0x69   : > { %1763 = vmatprep.mubr.msk.bf16.mxu1 %vm2005_vm0, %v2004_v1  ;;  %1775 = vmatprep.mubr.msk.bf16.mxu0 %vm2005_vm0, %v2004_v1 }
 0x122   : > { %v2209_v34 = vpop.f32.mrb[0].mxu0  ;;  %v2211_v35 = vpop.f32.mrb[0].mxu1 }
 0x123   : > { %v1709_v36 = vpop.f32.mrb[1].mxu0  ;;  %v1719_v37 = vpop.f32.mrb[1].mxu1  ;;  %v868_v63 = vsub.f32 0.0, %v2209_v34  ;;  %v869_v4 = vsub.f32 0.0, %v2211_v35  ;;  %v889_v19 = vmul.f32 %v866_v8, %v2209_v34 }
 0x124   : > { %v511_v38 = vpop.f32.mrb[2].mxu0  ;;  %v569_v39 = vpop.f32.mrb[2].mxu1 }
 0x125   : > { %v1710_v40 = vpop.f32.mrb[3].mxu0  ;;  %v1720_v41 = vpop.f32.mrb[3].mxu1 }
 0x12e   : > { %v636_v42 = vpop.f32.mrb[4].mxu0  ;;  %v694_v43 = vpop.f32.mrb[4].mxu1 }
 0x12f   : > { %832 = vrot.lane.b32.xlu1 %v694_v43, %s2006_s19  ;;  %830 = vrot.lane.b32.xlu0 %v636_v42, %s2006_s19  ;;  %v1729_v44 = vpop.f32.mrb[5].mxu0  ;;  %v1739_v45 = vpop.f32.mrb[5].mxu1 }
 0x130   : > { %v639_v46 = vpop.f32.mrb[6].mxu0  ;;  %v697_v47 = vpop.f32.mrb[6].mxu1 }
 0x131   : > { %v1730_v48 = vpop.f32.mrb[7].mxu0  ;;  %v1740_v49 = vpop.f32.mrb[7].mxu1  ;;  %v1020_v47 = vlaneseq }
 0x133   : > { %838 = vrot.lane.b32.xlu1 %v694_v43, %s2007_s20  ;;  %836 = vrot.lane.b32.xlu0 %v636_v42, %s2007_s20  ;;  %v1021_v48 = vshrl.u32 %v1020_v47, 7  ;;  %v1023_v49 = vand.u32 127, %v1020_v47 }
 0x135   : > { %vm1024_vm8 = vcmp.le.s32.totalorder %v1023_v49, %v1021_v48 }
 0x13b   : > { %v822_v39 = vpop.f32.mrb[8].mxu1 }
 0x13c   : > { %v1759_v40 = vpop.f32.mrb[9].mxu1 }
 0x1a1   : > { %v831_v56 = vpop.permute.xlu0 %830  ;;  %v833_v57 = vpop.permute.xlu1 %832 }
 0x1a2   : > { %v843_v58 = vsel %vm842_vm4, %v636_v42, %v831_v56  ;;  %v844_v0 = vsel %vm842_vm4, %v694_v43, %v833_v57  ;;  %v764_v42 = vpop.f32.mrb[8].mxu0 }
 0x1a3   : > { %v1883_v43 = vpack.i.bf16 %v822_v39, %v764_v42  ;;  %v1749_v44 = vpop.f32.mrb[9].mxu0 }
 0x1a4   : > { %v767_v45 = vpop.f32.mrb[10].mxu0 }
 0x1a5   : > { %v837_v59 = vpop.permute.xlu0 %836  ;;  %v839_v62 = vpop.permute.xlu1 %838 }
 0x1a6   : > { %v846_v60 = vsel %vm845_vm5, %v843_v58, %v837_v59  ;;  %v847_v2 = vsel %vm845_vm5, %v844_v0, %v839_v62  ;;  %v1750_v46 = vpop.f32.mrb[11].mxu0 }
 0x1a7   : > { %907 = vrot.lane.b32.xlu1 %v846_v60, %s2008_s17  ;;  %v895_v61 = vsub.f32 0.0, %v846_v60  ;;  %v896_v3 = vsub.f32 0.0, %v847_v2  ;;  %v915_v10 = vmul.f32 %v866_v8, %v846_v60  ;;  %v916_v23 = vmul.f32 %v866_v8, %v847_v2 }
 0x1a9   : > { %899 = vrot.lane.b32.xlu0 %v895_v61, %s2009_s18 }
 0x1ab   : > { %880 = vrot.lane.b32.xlu1 %v2209_v34, %s2008_s17  ;;  %v890_v34 = vmul.f32 %v866_v8, %v2211_v35 }
 0x1ad   : > { %872 = vrot.lane.b32.xlu0 %v868_v63, %s2009_s18 }
 0x1af   : > { %909 = vrot.lane.b32.xlu1 %v847_v2, %s2008_s17 }
 0x1b1   : > { %901 = vrot.lane.b32.xlu0 %v896_v3, %s2009_s18 }
 0x1b3   : > { %882 = vrot.lane.b32.xlu1 %v2211_v35, %s2008_s17  ;;  %v825_v35 = vpop.f32.mrb[10].mxu1  ;;  %s402_s17 = sand.u32 1, %s1994_s22  }
 0x1b4   : > { %v1760_v41 = vpop.f32.mrb[11].mxu1  ;;  %s1518_s25 = scalar_lea.sflag [#allocation3], %s402_s17 }
 0x1b5   : > { %874 = vrot.lane.b32.xlu0 %v869_v4, %s2009_s18  ;;  %s1594_s18 = sshll.u32 %s402_s17, 3 }
 0x1b6   : > { %s404_s28 = scalar_lea.vmem [#allocation2], %s1594_s18  ;;  %s2010_s18 = smov [#allocation2]  }
 0x1b7   : > { %s1531_s29 = sshll.u32 %s404_s28, 4  ;;  %s1944_s0 = sshll.u32 %s2010_s18, 4  ;;  %s2379_s29 = int_to_ptr.vmem [resolvable:$true] %s1531_s29  ;;  %s1945_s0 = int_to_ptr.vmem [resolvable:$false] %s1944_s0 }
 0x1b8   : > { %s1940_s16 = scalar_lea.vmem %s2379_s29, 128  ;;  %p1947_p0 = scmp.lt.s32.totalorder %s2379_s29, %s1945_s0 }
 0x1b9   : > { %p1941_p11 = scmp.ne.s32.totalorder %s2379_s29, %s1940_s16 }
 0x1bb   : > { %p1942_p12 = pnand %p1941_p11, %p2114_p5 }
 0x1bd   : > { %p1943_p13 = pneg %p1942_p12 }
 0x219   : > { %v908_v5 = vpop.permute.xlu1 %907 }
 0x21b   : > { %v900_v7 = vpop.permute.xlu0 %899 }
 0x21c   : > { %v913_v9 = vsel %vm886_vm6, %v900_v7, %v908_v5 }
 0x21d   : > { %v917_v11 = vmul.f32 %v913_v9, %v867_v6  ;;  %v881_v12 = vpop.permute.xlu1 %880 }
 0x21f   : > { %v919_v13 = vadd.f32 %v917_v11, %v915_v10  ;;  %v873_v14 = vpop.permute.xlu0 %872 }
 0x220   : > { %v887_v15 = vsel %vm886_vm6, %v873_v14, %v881_v12 }
 0x221   : > { %v923_v16 = vpack.c.bf16 %v919_v13, %v919_v13  ;;  %v891_v17 = vmul.f32 %v887_v15, %v867_v6  ;;  %v910_v18 = vpop.permute.xlu1 %909 }
 0x223   : > { %v902_v20 = vpop.permute.xlu0 %901  ;;  %v930_v21 = vsel %vm925_vm7, %v923_v16, 0  ;;  %v893_v24 = vadd.f32 %v891_v17, %v889_v19 }
 0x224   : > { %v914_v22 = vsel %vm886_vm6, %v902_v20, %v910_v18  ;;  %1762 = vmatpush3.bf16.xpose.msra.mxu1 %v930_v21 }
 0x225   : > { %v918_v25 = vmul.f32 %v914_v22, %v867_v6  ;;  %1767 = vmatprep.subr.bf16.mxu1 %v2004_v1  ;;  %v883_v28 = vpop.permute.xlu1 %882  ;;  %v921_v31 = vpack.c.bf16 %v893_v24, %v893_v24 }
 0x227   : > { %v920_v27 = vadd.f32 %v918_v25, %v916_v23  ;;  %v875_v29 = vpop.permute.xlu0 %874 }
 0x228   : > { %v888_v30 = vsel %vm886_vm6, %v875_v29, %v883_v28 }
 0x229   : > { %v924_v32 = vpack.c.bf16 %v920_v27, %v920_v27  ;;  %v892_v33 = vmul.f32 %v888_v30, %v867_v6 }
 0x22b   : > { %1764 = vmatmul.mubr.msk.bf16.vlgmr.msra.gmra.mrb[12].mxu1 %vm925_vm7, %v921_v31  ;;  %v976_v36 = vsel %vm925_vm7, %v924_v32, 0  ;;  %v894_v37 = vadd.f32 %v892_v33, %v890_v34  ;;  %v1906_v31 = vld [vmem:[%s2426_s6] sm:$0xff]   ;;  %v1907_v34 = vld [vmem:[%s2426_s6 + $0xc] sm:$0xff]  }
 0x22c   : > { %1768 = vmatpush3.bf16.xpose.msra.mxu1 %v976_v36  ;;  %1769 = vmatprep.mubr.msk.bf16.mxu1 %vm2005_vm0, %v2004_v1 }
 0x22d   : > { %1779 = vmatprep.subr.bf16.mxu1 %v2004_v1  ;;  %v922_v38 = vpack.c.bf16 %v894_v37, %v894_v37  ;;  %v1908_v37 = vld [vmem:[%s2426_s6 + $0x8] ss:$0 sps:$4 sm:$0xff]  }
 0x233   : > { %1770 = vmatmul.mubr.msk.bf16.vlgmr.msra.gmra.mrb[16].mxu1 %vm925_vm7, %v922_v38  ;;  %v1169_v38 = vsel %vm1058_vm9, %v1908_v37, 0 }
 0x234   : > { %1781 = vmatprep.mubr.msk.bf16.mxu1 %vm2005_vm0, %v2004_v1 }
 0x2fe   : > { %v966_v50 = vpop.f32.mrb[12].mxu1 }
 0x2ff   : > { %v1018_v51 = vmul.f32 0.20412415, %v966_v50  ;;  %v1765_v52 = vpop.f32.mrb[13].mxu1  ;;  %v1910_v50 = vld [vmem:[%s2427_s7] sm:$0xff]  }
 0x300   : > { %v969_v53 = vpop.f32.mrb[14].mxu1  ;;  %v1912_v52 = vld [vmem:[%s2427_s7 + $0x8] sm:$0xff]  }
 0x301   : > { %v1766_v54 = vpop.f32.mrb[15].mxu1  ;;  %v1027_v55 = vsel %vm1024_vm8, %v1018_v51, -1e+30  ;;  %v1911_v51 = vld [vmem:[%s2428_s8] sm:$0xff]   ;;  %v1913_v53 = vld [vmem:[%s2428_s8 + $0x8] sm:$0xff]  }
 0x302   : > { %v1029_v56 = vsel %vm842_vm4, %v1027_v55, -inf  ;;  %v1914_v54 = vld [vmem:[%s2427_s7 + $0x10] sm:$0xff]  }
 0x303   : > { %1030 = vmax.xlane.f32.xlu0 %v1029_v56 }
 0x306   : > { %v1012_v57 = vpop.f32.mrb[16].mxu1 }
 0x307   : > { %v1019_v58 = vmul.f32 0.20412415, %v1012_v57  ;;  %v1771_v59 = vpop.f32.mrb[17].mxu1 }
 0x308   : > { %v1015_v60 = vpop.f32.mrb[18].mxu1 }
 0x309   : > { %v1772_v61 = vpop.f32.mrb[19].mxu1  ;;  %v1028_v62 = vsel %vm1024_vm8, %v1019_v58, -1e+30 }
 0x30a   : > { %v1032_v63 = vsel %vm842_vm4, %v1028_v62, -inf }
 0x30b   : > { %1033 = vmax.xlane.f32.xlu1 %v1032_v63 }
 0x31c   : > { %1879 = vrot.lane.b32.xlu1 %v1883_v43, %s2006_s19 }
 0x390   : > { %v1031_v0 = vpop.xlane.xlu0 %1030 }
 0x391   : > { %v1035_v2 = vsub.f32 %v1027_v55, %v1031_v0  ;;  %v1915_v55 = vld [vmem:[%s2428_s8 + $0x10] sm:$0xff]  }
 0x393   : > { %v1037_v3 = vmul.f32 1.442695, %v1035_v2 }
 0x395   : > { %1924 = vpow2.f32 %v1037_v3 }
 0x398   : > { %v1034_v4 = vpop.xlane.xlu1 %1033 }
 0x399   : > { %v1036_v5 = vsub.f32 %v1028_v62, %v1034_v4 }
 0x39b   : > { %v1039_v6 = vmul.f32 1.442695, %v1036_v5 }
 0x39c   : > { %v1880_v12 = vpop.permute.xlu1 %1879 }
 0x39d   : > { %1926 = vpow2.f32 %v1039_v6  ;;  %v1882_v14 = vunpack.i.h.bf16 %v1880_v12  ;;  %v1881_v15 = vunpack.i.l.bf16 %v1880_v12 }
 0x39f   : > { %v1925_v7 = vpop.eup %1924  ;;  %v863_v20 = vsel %vm842_vm4, %v822_v39, %v1882_v14  ;;  %v862_v21 = vsel %vm842_vm4, %v764_v42, %v1881_v15  ;;  %v1909_v39 = vld [vmem:[%s2426_s6 + $0x14] ss:$0 sps:$4 sm:$0xff]  }
 0x3a0   : > { %v1041_v8 = vsel %vm842_vm4, %v1925_v7, 0.0  ;;  %v1224_v40 = vsel %vm1058_vm9, %v1909_v39, 0 }
 0x3a1   : > { %1042 = vadd.xlane.f32.xlu0 %v1041_v8 }
 0x3a7   : > { %v1927_v9 = vpop.eup %1926 }
 0x3a8   : > { %v1044_v10 = vsel %vm842_vm4, %v1927_v9, 0.0 }
 0x3a9   : > { %1045 = vadd.xlane.f32.xlu0 %v1044_v10 }
 0x3bf   : > { %1884 = vrot.lane.b32.xlu0 %v1883_v43, %s2007_s20  ;;  %s2377_s20 = scalar_lea.hbm %s2432_s12, %s1647_s26  ;;  %s1946_s26 = scalar_lea.vmem %s1945_s0, 256 }
 0x3c0   : > { %p1948_p1 = scmp.lt.s32.totalorder %s1946_s26, %s1940_s16 }
 0x3c2   : > { %p1949_p2 = por %p1948_p1, %p1947_p0 }
 0x3c4   : > { %p1950_p3 = pnand %p1949_p2, %p1943_p13 }
 0x42e   : > { %v1043_v11 = vpop.xlane.xlu0 %1042 }
 0x42f   : > { %1928 = vrcp.f32 %v1043_v11 }
 0x436   : > { %v1046_v13 = vpop.xlane.xlu0 %1045 }
 0x437   : > { %1930 = vrcp.f32 %v1046_v13 }
 0x439   : > { %v1929_v17 = vpop.eup %1928 }
 0x43a   : > { %v1885_v16 = vpop.permute.xlu0 %1884  ;;  %v1049_v24 = vmul.f32 %v1929_v17, %v1925_v7 }
 0x43b   : > { %v1887_v18 = vunpack.i.h.bf16 %v1885_v16  ;;  %v1886_v19 = vunpack.i.l.bf16 %v1885_v16 }
 0x43c   : > { %v1051_v33 = vpack.c.bf16 %v1049_v24, %v1049_v24  ;;  %v1916_v24 = vld [vmem:[%s2429_s9] sm:$0xff]  }
 0x43d   : > { %v864_v22 = vsel %vm845_vm5, %v862_v21, %v1886_v19  ;;  %v865_v23 = vsel %vm845_vm5, %v863_v20, %v1887_v18  ;;  %v1631_v20 = vld [vmem:[%s2422_s2] ss:$0 sm:$0xff] }
 0x43e   : > { %v1053_v25 = vpack.c.bf16 %v864_v22, %v864_v22  ;;  %v1054_v27 = vpack.c.bf16 %v865_v23, %v865_v23 }
 0x440   : > { %v1060_v28 = vsel %vm1058_vm9, %v1053_v25, 0  ;;  %v1106_v29 = vsel %vm1058_vm9, %v1054_v27, 0  ;;  %v1917_v25 = vld [vmem:[%s2429_s9 + $0x8] sm:$0xff]   ;;  %v1918_v27 = vld [vmem:[%s2429_s9 + $0x10] sm:$0xff]  }
 0x441   : > { %v1931_v30 = vpop.eup %1930  ;;  %1774 = vmatpush3.bf16.msra.mxu0 %v1060_v28  ;;  %1780 = vmatpush3.bf16.msra.mxu1 %v1106_v29  ;;  %v1919_v28 = vld [vmem:[%s2429_s9 + $0x18] sm:$0xff]  }
 0x442   : > { %v1050_v32 = vmul.f32 %v1931_v30, %v1927_v9  ;;  %1785 = vmatprep.subr.bf16.mxu0 %v2004_v1  ;;  %1793 = vmatprep.subr.bf16.mxu1 %v2004_v1 }
 0x444   : > { %1776 = vmatmul.mubr.msk.bf16.vlgmr.msra.gmra.mrb[12].mxu0 %vm842_vm4, %v1051_v33  ;;  %v1052_v36 = vpack.c.bf16 %v1050_v32, %v1050_v32 }
 0x445   : > { %1786 = vmatpush3.bf16.msra.mxu0 %v1906_v31  ;;  %1789 = vmatprep.mubr.msk.bf16.mxu0 %vm2005_vm0, %v2004_v1 }
 0x446   : > { %1782 = vmatmul.mubr.msk.bf16.vlgmr.msra.gmra.mrb[20].mxu1 %vm842_vm4, %v1052_v36  ;;  %1787 = vmatprep.subr.bf16.mxu0 %v2004_v1 }
 0x447   : > { %1794 = vmatpush3.bf16.msra.mxu1 %v1907_v34  ;;  %1797 = vmatprep.mubr.msk.bf16.mxu1 %vm2005_vm0, %v2004_v1 }
 0x448   : > { %1795 = vmatprep.subr.bf16.mxu1 %v2004_v1 }
 0x449   : > { %1788 = vmatpush3.bf16.msra.mxu0 %v1169_v38 }
 0x44a   : > { %1801 = vmatprep.subr.bf16.mxu0 %v2004_v1 }
 0x44b   : > { %1796 = vmatpush3.bf16.msra.mxu1 %v1224_v40 }
 0x44c   : > { %1811 = vmatprep.subr.bf16.mxu1 %v2004_v1 }
 0x517   : > { %v1096_v35 = vpop.f32.mrb[12].mxu0 }
 0x518   : > { %v1148_v41 = vpack.c.bf16 %v1096_v35, %v1096_v35  ;;  %v1777_v42 = vpop.f32.mrb[13].mxu0 }
 0x519   : > { %v1099_v43 = vpop.f32.mrb[14].mxu0  ;;  %v1142_v44 = vpop.f32.mrb[20].mxu1 }
 0x51a   : > { %v1149_v45 = vpack.c.bf16 %v1142_v44, %v1142_v44  ;;  %v1778_v46 = vpop.f32.mrb[15].mxu0  ;;  %v1783_v47 = vpop.f32.mrb[21].mxu1  ;;  %1790 = vmatmul.mubr.msk.bf16.vlgmr.msra.gmra.mrb[16].mxu0 %vm925_vm7, %v1148_v41 }
 0x51b   : > { %v1145_v48 = vpop.f32.mrb[22].mxu1  ;;  %1807 = vmatprep.mubr.msk.bf16.mxu0 %vm2005_vm0, %v2004_v1  ;;  %1802 = vmatpush3.bf16.msra.mxu0 %v1910_v50 }
 0x51c   : > { %v1784_v49 = vpop.f32.mrb[23].mxu1  ;;  %1798 = vmatmul.mubr.msk.bf16.vlgmr.msra.gmra.mrb[24].mxu1 %vm925_vm7, %v1149_v45  ;;  %1803 = vmatprep.subr.bf16.mxu0 %v2004_v1 }
 0x51d   : > { %1817 = vmatprep.mubr.msk.bf16.mxu1 %vm2005_vm0, %v2004_v1  ;;  %1812 = vmatpush3.bf16.msra.mxu1 %v1911_v51 }
 0x51e   : > { %1813 = vmatprep.subr.bf16.mxu1 %v2004_v1 }
 0x51f   : > { %1804 = vmatpush3.bf16.msra.mxu0 %v1912_v52 }
 0x520   : > { %1805 = vmatprep.subr.bf16.mxu0 %v2004_v1 }
 0x521   : > { %1814 = vmatpush3.bf16.msra.mxu1 %v1913_v53 }
 0x522   : > { %1815 = vmatprep.subr.bf16.mxu1 %v2004_v1 }
 0x523   : > { %1806 = vmatpush3.bf16.msra.mxu0 %v1914_v54 }
 0x524   : > { %1821 = vmatprep.subr.bf16.mxu0 %v2004_v1 }
 0x525   : > { %1816 = vmatpush3.bf16.msra.mxu1 %v1915_v55 }
 0x5ed   : > { %v1205_v56 = vpop.f32.mrb[16].mxu0 }
 0x5ee   : > { %v1791_v57 = vpop.f32.mrb[17].mxu0  ;;  %v1266_v60 = vsel %vm412_vm1, %v1205_v56, 0.0 }
 0x5ef   : > { %v1208_v58 = vpop.f32.mrb[18].mxu0  ;;  %v1260_v59 = vpop.f32.mrb[24].mxu1 }
 0x5f0   : > { %v1267_v61 = vsel %vm412_vm1, %v1260_v59, 0.0  ;;  %v1792_v62 = vpop.f32.mrb[19].mxu0  ;;  %v1799_v63 = vpop.f32.mrb[25].mxu1 }
 0x5f1   : > { %v1268_v0 = vadd.f32 %v1267_v61, %v1266_v60  ;;  %v1263_v2 = vpop.f32.mrb[26].mxu1 }
 0x5f2   : > { %v1800_v3 = vpop.f32.mrb[27].mxu1 }
 0x5f3   : > { %v1269_v4 = vadd.f32 %v1268_v0, %v2163_v26 }
 0x5f5   : > { %v1270_v5 = vmul.f32 %v1269_v4, %v1269_v4 }
 0x5f7   : > { %v1271_v6 = vsel %vm412_vm1, %v1270_v5, 0.0 }
 0x5f8   : > { %v1272_v7 = vrot.slane %v1271_v6, 4 }
 0x5fa   : > { %v1273_v8 = vadd.f32 %v1272_v7, %v1271_v6 }
 0x5fc   : > { %v1274_v9 = vrot.slane %v1273_v8, 2 }
 0x5fe   : > { %v1275_v10 = vadd.f32 %v1274_v9, %v1273_v8 }
 0x600   : > { %v1276_v11 = vrot.slane %v1275_v10, 1 }
 0x602   : > { %v1277_v12 = vadd.f32 %v1276_v11, %v1275_v10 }
 0x604   : > { %v1278_v13 = vmul.f32 0.125, %v1277_v12 }
 0x606   : > { %1932 = vrsqrt.f32 %v1278_v13  ;;  %vm1281_vm10 = vcmp.eq.f32.partialorder %v1278_v13, inf  ;;  %v1284_v16 = vand.u32 2147483648, %v1278_v13  ;;  %vm1283_vm11 = vcmp.eq.f32.partialorder %v1278_v13, 0.0 }
 0x610   : > { %v1933_v14 = vpop.eup %1932 }
 0x611   : > { %v1280_v15 = vmul.f32 %v1933_v14, %v1278_v13 }
 0x613   : > { %v1282_v17 = vsel %vm1281_vm10, %v1278_v13, %v1280_v15 }
 0x614   : > { %v1285_v18 = vsel %vm1283_vm11, %v1284_v16, %v1282_v17 }
 0x615   : > { %v1286_v19 = vadd.f32 1e-05, %v1285_v18 }
 0x617   : > { %1934 = vrcp.f32 %v1286_v19 }
 0x621   : > { %v1935_v26 = vpop.eup %1934 }
 0x622   : > { %v1288_v21 = vmul.f32 %v1935_v26, %v1269_v4 }
 0x624   : > { %v1296_v22 = vmul.f32 %v1631_v20, %v1288_v21 }
 0x626   : > { %v1297_v23 = vpack.c.bf16 %v1296_v22, %v1296_v22 }
 0x628   : > { %1808 = vmatmul.mubr.msk.bf16.vlgmr.msra.gmra.mrb[20].mxu0 %vm412_vm1, %v1297_v23  ;;  %1818 = vmatmul.mubr.msk.bf16.vlgmr.msra.gmra.mrb[28].mxu1 %vm412_vm1, %v1297_v23 }
 0x629   : > { %1829 = vmatprep.mubr.msk.bf16.mxu0 %vm2005_vm0, %v2004_v1  ;;  %1822 = vmatpush3.bf16.msra.mxu0 %v1916_v24 }
 0x62a   : > { %1823 = vmatprep.subr.bf16.mxu0 %v2004_v1 }
 0x62d   : > { %1824 = vmatpush3.bf16.msra.mxu0 %v1917_v25 }
 0x62e   : > { %1825 = vmatprep.subr.bf16.mxu0 %v2004_v1 }
 0x631   : > { %1826 = vmatpush3.bf16.msra.mxu0 %v1918_v27 }
 0x632   : > { %1827 = vmatprep.subr.bf16.mxu0 %v2004_v1 }
 0x635   : > { %1828 = vmatpush3.bf16.msra.mxu0 %v1919_v28 }
 0x6fb   : > { %v1359_v29 = vpop.f32.mrb[20].mxu0  ;;  %v1423_v30 = vpop.f32.mrb[28].mxu1 }
 0x6fc   : > { %v1429_v31 = vmul.f32 %v1423_v30, %v1359_v29  ;;  %v1809_v32 = vpop.f32.mrb[21].mxu0  ;;  %v1819_v33 = vpop.f32.mrb[29].mxu1 }
 0x6fd   : > { %v1362_v34 = vpop.f32.mrb[22].mxu0  ;;  %v1426_v36 = vpop.f32.mrb[30].mxu1 }
 0x6fe   : > { %v1640_v37 = vmul.f32 -1.442695, %v1429_v31  ;;  %v1810_v38 = vpop.f32.mrb[23].mxu0  ;;  %v1820_v39 = vpop.f32.mrb[31].mxu1 }
 0x700   : > { %1936 = vpow2.f32 %v1640_v37 }
 0x70a   : > { %v1937_v40 = vpop.eup %1936 }
 0x70b   : > { %v1433_v1 = vadd.f32 1.0, %v1937_v40 }
 0x70d   : > { %1938 = vrcp.f32 %v1433_v1 }
 0x717   : > { %v1939_v35 = vpop.eup %1938 }
 0x718   : > { %v1436_v41 = vmul.f32 %v1939_v35, %v1429_v31 }
 0x71a   : > { %v1437_v42 = vpack.c.bf16 %v1436_v41, %v1436_v41 }
 0x71c   : > { %1830 = vmatmul.mubr.msk.bf16.vlgmr.msra.gmra.mrb[24].mxu0 %vm1470_vm12, %v1437_v42 }
 0x7ef   : > { %v1508_v43 = vpop.f32.mrb[24].mxu0 }
 0x7f0   : > { %v1514_v44 = vadd.f32 %v1508_v43, %v1296_v22  ;;  %v1831_v45 = vpop.f32.mrb[25].mxu0 }
 0x7f1   : > { %v1511_v46 = vpop.f32.mrb[26].mxu0 }
 0x7f2   : > { %v1515_v47 = vsel %vm412_vm1, %v1514_v44, 0.0  ;;  %v1832_v48 = vpop.f32.mrb[27].mxu0 }
 0x7f3   : > { %1516 = vst [vmem:[%s404_s28] sm:$0xff] %v1515_v47 }
 0x7f4   : > { %1953 = shalt.err (!%p1950_p3)
}
 0x7f5   : > { %s1954_s17 = scalar_lea.hbm %s2377_s20, 128  ;;  %s1958_s19 = scalar_lea.hbm %s2432_s12, 256 }
 0x7f6   : > { %p1955_p4 = scmp.ne.s32.totalorder %s2377_s20, %s1954_s17  ;;  %p1959_p9 = scmp.lt.u32.totalorder %s2377_s20, %s2432_s12 }
 0x7f7   : > { %p1960_p10 = scmp.lt.u32.totalorder %s1958_s19, %s1954_s17  ;;  %p1962_p12 = scmp.lt.u32.totalorder %s1954_s17, %s2377_s20 }
 0x7f8   : > { %p1956_p7 = pnand %p1955_p4, %p2114_p5 }
 0x7f9   : > { %p1961_p11 = por %p1960_p10, %p1959_p9 }
 0x7fa   : > { %p1957_p8 = pneg %p1956_p7 }
 0x7fb   : > { %p1963_p13 = por %p1962_p12, %p1961_p11 }
 0x7fd   : > { %p1964_p0 = pnand %p1963_p13, %p1957_p8 }
 0x7ff   : > { %1967 = shalt.err (!%p1964_p0)
}
 0x800   : > { %1833 = dma.vmem_to_hbm [thread:$0]  (%p2114_p5), %s2379_s29, 128, %s2377_s20, %s1518_s25  }
 0x801 PF: > { %p1839_p1 = scmp.ge.s32.totalorder %s2002_s24, 2  ;;  %s1543_s16 = sand.u32 1, %s1990_s21  }
 0x802   : > { %s1544_s26 = scalar_lea.sflag [#allocation3], %s1543_s16 }
 0x803   : > { %p1836_p2 = pnand %p1839_p1, %p2118_p6 }
 0x805   : > { %1985 = dma.done.wait (!%p1836_p2), %s1544_s26, 128  }
 0x806   : > { %1987 = vsyncadd (!%p1836_p2), %s1544_s26, 4294967168  ;;  %p22_p3 = scmp.ge.s32.totalorder %s2101_s27, 4   ;;  %s2437_s21 = smov %s1994_s22 }
 0x807   : > { %s2438_s22 = smov %s1998_s23  ;;  %s2439_s23 = smov %s2112_s30 }
 0x808   : > { %s2440_s24 = smov %s2101_s27  ;;  %24 = sbr.rel (!%p22_p3) target bundleno = 5 (0x5), region = 103 }
 0x80f   :  { %1549 = vsyncpa [#allocation3], 1 }
 0x810   :  { %1551 = vsyncpa [#allocation3 + $0x1], 1 }

</bundles_post_ra>
